<compile_context>
chip_gen: v7x
topology: tpu7x:2x2x1
jax: 0.10.0
libtpu: 0.0.40
codegen_flags: <defaults>
</compile_context>

<pallas_src>
import math
import functools

import jax
import jax.numpy as jnp
from jax import lax
from jax.experimental import pallas as pl
from jax.experimental.pallas import tpu as pltpu


_INV_SQRT2 = 1.0 / math.sqrt(2.0)

# Conservative VMEM budgets (bytes).  v7x has only 64 MiB physical VMEM (32 MiB
# scoped default); v5e/v6e have 128 MiB physical, so staying under these is safe
# on every generation.
_VMEM_TILE_BUDGET = 48 << 20        # total double-buffered tile footprint
_WEIGHT_RESIDENT_BUDGET = 24 << 20  # 2x full weight (double-buffered) for residency


def _round_up(x, m):
    return (x + m - 1) // m * m


def _gelu_f32(x, exact):
    if exact:
        # Exact GELU: bit-matches the torch erf implementation.
        return x * 0.5 * (1.0 + lax.erf(x * _INV_SQRT2))
    # tanh approximation: tanh lowers to the EUP (its own VLIW slot), keeping the
    # VALU free for the epilogue.  ~1e-3 relative difference vs. erf.
    return jax.nn.gelu(x, approximate=True)


def _bert_intermediate_kernel(x_ref, w_ref, b_ref, o_ref, *, compute_dtype, exact_gelu):
    # x_ref: (tm, H) in the activation dtype  -> cast to compute dtype in-kernel
    # w_ref: (H, tn) compute dtype            b_ref: (1, tn) f32
    x = x_ref[...].astype(compute_dtype)
    acc = jnp.dot(x, w_ref[...], preferred_element_type=jnp.float32)
    acc = acc + b_ref[...]                       # f32 bias broadcast over rows
    o_ref[...] = _gelu_f32(acc, exact_gelu).astype(o_ref.dtype)


@functools.partial(jax.jit, static_argnames=(
    "out_features", "tm_eff", "tn_eff", "compute_dtype", "exact_gelu", "vmem_limit"))
def _bert_intermediate_apply(x, w_p, b_p, *, out_features, tm_eff, tn_eff,
                             compute_dtype, exact_gelu, vmem_limit):
    *lead, H = x.shape
    M = math.prod(lead) if lead else 1
    out_dtype = x.dtype
    I_pad = w_p.shape[1]

    x2d = x.reshape(M, H)
    M_pad = _round_up(M, tm_eff)
    if M_pad != M:
        x2d = jnp.pad(x2d, ((0, M_pad - M), (0, 0)))

    num_m = M_pad // tm_eff
    num_n = I_pad // tn_eff
    grid = (num_m, num_n)   # m outer, n inner: x block revisited over n -> DMA'd once

    kernel = functools.partial(_bert_intermediate_kernel,
                               compute_dtype=compute_dtype, exact_gelu=exact_gelu)

    w_bytes = w_p.size * w_p.dtype.itemsize
    cost = pl.CostEstimate(
        flops=2 * M_pad * H * I_pad,
        transcendentals=M_pad * I_pad,            # one activation per output element
        bytes_accessed=(x2d.size * x2d.dtype.itemsize                       # x once
                        + (w_bytes if num_n == 1 else w_bytes * num_m)      # W traffic
                        + b_p.size * b_p.dtype.itemsize
                        + M_pad * I_pad * jnp.dtype(out_dtype).itemsize),
    )

    out = pl.pallas_call(
        kernel,
        out_shape=jax.ShapeDtypeStruct((M_pad, I_pad), out_dtype),
        grid_spec=pltpu.PrefetchScalarGridSpec(
            num_scalar_prefetch=0,
            grid=grid,
            in_specs=[
                pl.BlockSpec((tm_eff, H), lambda m, n: (m, 0)),   # x row tile
                pl.BlockSpec((H, tn_eff), lambda m, n: (0, n)),   # weight column block
                pl.BlockSpec((1, tn_eff), lambda m, n: (0, n)),   # f32 bias block
            ],
            out_specs=pl.BlockSpec((tm_eff, tn_eff), lambda m, n: (m, n)),
        ),
        compiler_params=pltpu.CompilerParams(
            dimension_semantics=("parallel", "parallel"),
            vmem_limit_bytes=vmem_limit,
        ),
        cost_estimate=cost,
    )(x2d, w_p, b_p)

    if M_pad != M or I_pad != out_features:
        out = out[:M, :out_features]
    return out.reshape(*lead, out_features)


def make_bert_intermediate(weight, bias, *, tm=512, tn=1024,
                           compute_dtype=jnp.bfloat16, exact_gelu=False):
    """Pre-cast / pre-pad the Linear weight [H, I] (= torch `weight.T`) and bias [I]
    ONCE, and return a callable hidden_states [..., H] -> [..., I].

    compute_dtype: matmul operand dtype (bf16 default = fast MXU path); accumulation,
    bias add and GELU are always float32.  exact_gelu=True uses the erf GELU that
    bit-matches the PyTorch module; the default uses the tanh approximation (EUP).
    """
    H, I = weight.shape
    compute_dtype = jnp.dtype(compute_dtype)
    c_isz = compute_dtype.itemsize

    I_pad128 = _round_up(I, 128)
    # Full-weight residency (single n block): x streamed once, W DMA'd once.
    # Gate on the double-buffered weight size so e.g. a large f32 weight falls back
    # to column tiling instead of blowing v7x's VMEM.
    if 2 * H * I_pad128 * c_isz <= _WEIGHT_RESIDENT_BUDGET:
        tn_eff = I_pad128
    else:
        tn_eff = max(128, min(_round_up(tn, 128), I_pad128))
    I_pad = _round_up(I, tn_eff)

    # Prepare params once (no per-call cast/pad HBM traffic for W and b).
    w_p = jnp.pad(weight.astype(compute_dtype), ((0, 0), (0, I_pad - I)))
    b_p = jnp.pad(bias.astype(jnp.float32), (0, I_pad - I)).reshape(1, I_pad)

    tm_base = max(8, _round_up(tm, 8))

    def apply(hidden_states):
        *lead, Hx = hidden_states.shape
        assert Hx == H, f"expected hidden size {H}, got {Hx}"
        M = math.prod(lead) if lead else 1
        x_isz = jnp.dtype(hidden_states.dtype).itemsize

        tm_eff = min(tm_base, _round_up(M, 8))

        def vmem_bytes(tm_e):
            # double-buffered: x block + weight block + output block + bias block
            return 2 * (tm_e * H * x_isz
                        + H * tn_eff * c_isz
                        + tm_e * tn_eff * x_isz
                        + tn_eff * 4)

        # Shrink the row tile until the footprint fits the cross-generation budget.
        while vmem_bytes(tm_eff) > _VMEM_TILE_BUDGET and tm_eff > 256:
            tm_eff = max(256, _round_up(tm_eff // 2, 8))

        vmem_limit = int(min(max(vmem_bytes(tm_eff) * 1.3, 32 << 20), 56 << 20))

        return _bert_intermediate_apply(
            hidden_states, w_p, b_p,
            out_features=I, tm_eff=tm_eff, tn_eff=tn_eff,
            compute_dtype=compute_dtype, exact_gelu=exact_gelu,
            vmem_limit=vmem_limit)

    return apply


def bert_intermediate(hidden_states, weight, bias, **kwargs):
    """One-shot convenience wrapper (prepares params on every call; prefer
    make_bert_intermediate for repeated use)."""
    return make_bert_intermediate(weight, bias, **kwargs)(hidden_states)


def _reference(hidden_states, weight, bias):
    y = jnp.einsum("bsh,hi->bsi", hidden_states, weight) + bias
    return y * 0.5 * (1.0 + lax.erf(y * _INV_SQRT2))


if __name__ == "__main__":
    # config: hidden_size=32, intermediate_size=128, hidden_act='gelu'
    batch, seq, hidden, intermediate = 2, 8, 32, 128

    key = jax.random.PRNGKey(0)
    kx, kw, kb = jax.random.split(key, 3)

    x = jax.random.normal(kx, (batch, seq, hidden), dtype=jnp.float32)
    # deterministic Linear-like init (uniform bound); weight stored as [H, I] = W^T
    bound = 1.0 / math.sqrt(hidden)
    w = jax.random.uniform(kw, (hidden, intermediate), jnp.float32, -bound, bound)
    b = jax.random.uniform(kb, (intermediate,), jnp.float32, -bound, bound)

    ref = _reference(x, w, b)

    # Fast default path: bf16 operands + tanh-approx GELU (looser tolerance).
    fast = make_bert_intermediate(w, b)
    out_fast = jax.block_until_ready(fast(x))
    assert out_fast.shape == (batch, seq, intermediate)
    assert jnp.allclose(out_fast, ref, atol=5e-2, rtol=5e-2), "fast path mismatch"

    # Exact path: f32 operands + erf GELU (bit-matches the torch module semantics).
    exact = make_bert_intermediate(w, b, compute_dtype=jnp.float32, exact_gelu=True)
    out_exact = jax.block_until_ready(exact(x))
    assert out_exact.shape == (batch, seq, intermediate)
    assert jnp.allclose(out_exact, ref, atol=1e-5, rtol=1e-5), "exact path mismatch"

    # TODO(synk): self.dropout is defined in the module but never used in forward(),
    # so it is intentionally not implemented.
    print("KERNEL_OK")
</pallas_src>

<mosaic_0001>
module attributes {stable_mosaic.version = 11 : i64} {
  func.func @_bert_intermediate_kernel(%arg0: i32, %arg1: i32, %arg2: memref<16x32xf32, #tpu.memory_space<vmem>>, %arg3: memref<32x128xbf16, #tpu.memory_space<vmem>>, %arg4: memref<1x128xf32, #tpu.memory_space<vmem>>, %arg5: memref<16x128xf32, #tpu.memory_space<vmem>>) attributes {dimension_semantics = [#tpu.dimension_semantics<parallel>, #tpu.dimension_semantics<parallel>], iteration_bounds = array<i64: 1, 1>, scalar_prefetch = 0 : i64, scratch_operands = 0 : i64, tpu.core_type = #tpu.core_type<tc>, window_params = [{transform_indices = @transform_0, window_bounds = array<i64: 16, 32>}, {transform_indices = @transform_1, window_bounds = array<i64: 32, 128>}, {transform_indices = @transform_2, window_bounds = array<i64: 1, 128>}, {transform_indices = @transform_3, window_bounds = array<i64: 16, 128>}]} {
    %c0 = arith.constant 0 : index
    %c0_0 = arith.constant 0 : index
    %0 = vector.load %arg2[%c0, %c0_0] : memref<16x32xf32, #tpu.memory_space<vmem>>, vector<16x32xf32>
    %1 = arith.truncf %0 : vector<16x32xf32> to vector<16x32xbf16>
    %c0_1 = arith.constant 0 : index
    %c0_2 = arith.constant 0 : index
    %2 = vector.load %arg3[%c0_1, %c0_2] : memref<32x128xbf16, #tpu.memory_space<vmem>>, vector<32x128xbf16>
    %cst = arith.constant dense<0.000000e+00> : vector<16x128xf32>
    %3 = tpu.matmul %1, %2, %cst {dimension_numbers = #tpu.dot_dimension_numbers<[1], [0], [0], [1], [0, 0, 1, 1], [], []>} : vector<16x32xbf16>, vector<32x128xbf16>, vector<16x128xf32> -> vector<16x128xf32>
    %c0_3 = arith.constant 0 : index
    %c0_4 = arith.constant 0 : index
    %4 = vector.load %arg4[%c0_3, %c0_4] : memref<1x128xf32, #tpu.memory_space<vmem>>, vector<1x128xf32>
    %5 = vector.broadcast %4 : vector<1x128xf32> to vector<16x128xf32>
    %6 = arith.addf %3, %5 : vector<16x128xf32>
    %7 = arith.mulf %6, %6 : vector<16x128xf32>
    %8 = arith.mulf %6, %7 : vector<16x128xf32>
    %cst_5 = arith.constant 4.471500e-02 : f32
    %9 = vector.broadcast %cst_5 : f32 to vector<16x128xf32>
    %10 = arith.mulf %9, %8 : vector<16x128xf32>
    %11 = arith.addf %6, %10 : vector<16x128xf32>
    %cst_6 = arith.constant 0.797884583 : f32
    %12 = vector.broadcast %cst_6 : f32 to vector<16x128xf32>
    %13 = arith.mulf %12, %11 : vector<16x128xf32>
    %14 = math.tanh %13 : vector<16x128xf32>
    %cst_7 = arith.constant 1.000000e+00 : f32
    %15 = vector.broadcast %cst_7 : f32 to vector<16x128xf32>
    %16 = arith.addf %15, %14 : vector<16x128xf32>
    %cst_8 = arith.constant 5.000000e-01 : f32
    %17 = vector.broadcast %cst_8 : f32 to vector<16x128xf32>
    %18 = arith.mulf %17, %16 : vector<16x128xf32>
    %19 = arith.mulf %6, %18 : vector<16x128xf32>
    %c0_9 = arith.constant 0 : index
    %c0_10 = arith.constant 0 : index
    %20 = vector.load %arg5[%c0_9, %c0_10] : memref<16x128xf32, #tpu.memory_space<vmem>>, vector<16x128xf32>
    tpu.vector_store %arg5[%c0_9, %c0_10], %19 {strides = array<i32>} : memref<16x128xf32, #tpu.memory_space<vmem>>, vector<16x128xf32>,
    return
  }
  func.func @transform_0(%arg0: i32, %arg1: i32) -> (i32, i32) {
    %c0_i32 = arith.constant 0 : i32
    %c0_i32_0 = arith.constant 0 : i32
    return %arg0, %c0_i32 : i32, i32
  }
  func.func @transform_1(%arg0: i32, %arg1: i32) -> (i32, i32) {
    %c0_i32 = arith.constant 0 : i32
    %c0_i32_0 = arith.constant 0 : i32
    return %c0_i32, %arg1 : i32, i32
  }
  func.func @transform_2(%arg0: i32, %arg1: i32) -> (i32, i32) {
    %c0_i32 = arith.constant 0 : i32
    %c0_i32_0 = arith.constant 0 : i32
    return %c0_i32, %arg1 : i32, i32
  }
  func.func @transform_3(%arg0: i32, %arg1: i32) -> (i32, i32) {
    %c0_i32 = arith.constant 0 : i32
    return %arg0, %arg1 : i32, i32
  }
}

</mosaic_0001>

<bundles_post_ra>
// kernel: _bert_intermediate_apply.1
= control target key start
LH: loop header
LB: loop body
LE: loop exit
PB: predicated region body
PF: predicated region fallthrough
CT: control target
= control target key end

     0   :  { %8 = vsyncpa [#allocation3], 0  ;;  %s329_s0 = inlined_call_operand.hbm [shape: f32[16,32], index: 0, kind: input, shape index: {}]   ;;  %s330_s1 = inlined_call_operand.hbm [shape: bf16[32,128], index: 1, kind: input, shape index: {}]   ;;  %s331_s2 = inlined_call_operand.vmem [shape: f32[1,128], index: 2, kind: input, shape index: {}]   ;;  %s332_s3 = inlined_call_operand.hbm [shape: f32[16,128], index: 3, kind: output, shape index: {}]  }
   0x1   :  { %9 = vsyncpa [#allocation6], 0 }
   0x2   :  { %10 = vsyncpa [#allocation4], 0  ;;  %s255_s12 = smov [#allocation2]   ;;  %s183_s16 = scalar_lea.hbm %s329_s0, 256 }
   0x3   :  { %s16_s13 = sshll.u32 %s255_s12, 4  ;;  %p184_p0 = scmp.ne.s32.totalorder %s329_s0, %s183_s16  ;;  %s17_s13 = int_to_ptr.vmem [resolvable:$true] %s16_s13 }
   0x4   :  { %p187_p1 = scmp.lt.u32.totalorder %s183_s16, %s329_s0 }
   0x6   :  { %p189_p2 = pnand %p187_p1, %p184_p0 }
   0x8   :  { %192 = shalt.err (!%p189_p2)
}
   0x9   :  { %s193_s21 = scalar_lea.vmem %s17_s13, 256  ;;  %p198_p4 = scmp.lt.s32.totalorder %s17_s13, %s17_s13 }
   0xa   :  { %p194_p3 = scmp.ne.s32.totalorder %s17_s13, %s193_s21  ;;  %p199_p5 = scmp.lt.s32.totalorder %s193_s21, %s193_s21 }
   0xc   :  { %p200_p6 = por %p199_p5, %p198_p4 }
   0xe   :  { %p201_p7 = pnand %p200_p6, %p194_p3 }
  0x10   :  { %204 = shalt.err (!%p201_p7)
}
  0x11   :  { %s256_s22 = smov 128   ;;  %s257_s23 = smov 8  }
  0x12   :  { %22 = dma.hbm_to_vmem [thread:$0]  %s329_s0, 256, %s17_s13, [#allocation3], %s256_s22, %s256_s22, %s257_s23  }
  0x13   :  { %s258_s26 = smov [#allocation5]   ;;  %s205_s30 = scalar_lea.hbm %s330_s1, 256 }
  0x14   :  { %s28_s27 = sshll.u32 %s258_s26, 4  ;;  %p206_p8 = scmp.ne.s32.totalorder %s330_s1, %s205_s30  ;;  %s29_s27 = int_to_ptr.vmem [resolvable:$true] %s28_s27 }
  0x15   :  { %p209_p9 = scmp.lt.u32.totalorder %s205_s30, %s330_s1 }
  0x17   :  { %p211_p10 = pnand %p209_p9, %p206_p8 }
  0x19   :  { %214 = shalt.err (!%p211_p10)
}
  0x1a   :  { %s215_s8 = scalar_lea.vmem %s29_s27, 256  ;;  %p220_p12 = scmp.lt.s32.totalorder %s29_s27, %s29_s27 }
  0x1b   :  { %p216_p11 = scmp.ne.s32.totalorder %s29_s27, %s215_s8  ;;  %p221_p13 = scmp.lt.s32.totalorder %s215_s8, %s215_s8 }
  0x1d   :  { %p222_p0 = por %p221_p13, %p220_p12 }
  0x1f   :  { %p223_p1 = pnand %p222_p0, %p216_p11 }
  0x21   :  { %226 = shalt.err (!%p223_p1)
}
  0x22   :  { %s259_s0 = smov 64   ;;  %s260_s9 = smov 4  }
  0x23   :  { %34 = dma.hbm_to_vmem [thread:$0]  %s330_s1, 256, %s29_s27, [#allocation6], %s259_s0, %s259_s0, %s260_s9  }
  0x24   :  { %249 = dma.done.wait [#allocation3], 256  }
  0x25   :  { %250 = vsyncadd [#allocation3], 4294967040 }
  0x26   :  { %251 = dma.done.wait [#allocation6], 256  }
  0x27   :  { %252 = vsyncadd [#allocation6], 4294967040  ;;  %v261_v0 = vmov 0.0   ;;  %vm262_vm0 = vmmov 0   ;;  %v177_v1 = vld [vmem:[#allocation5] sm:$0xff]   ;;  %v178_v2 = vld [vmem:[#allocation5 + $0x8] sm:$0xff]  }
  0x28   :  { %160 = vmatprep.subr.bf16.mxu0 %v261_v0  ;;  %164 = vmatprep.mubr.msk.bf16.mxu0 %vm262_vm0, %v261_v0  ;;  %v44_v3 = vld [vmem:[#allocation2] sm:$0xff]  ;;  %v45_v4 = vld [vmem:[#allocation2 + $0x8] sm:$0xff]  ;;  %vm70_vm1 = vcmask 261120  }
  0x29   :  { %161 = vmatpush3.bf16.msra.mxu0 %v177_v1  ;;  %v46_v5 = vpack.c.bf16 %v45_v4, %v44_v3  ;;  %v153_v6 = vld [vmem:[%s331_s2] ss:$0 sm:$0xff]  ;;  %s263_s2 = smov [#allocation7]  }
  0x2a   :  { %162 = vmatprep.subr.bf16.mxu0 %v261_v0  ;;  %s140_s13 = sshll.u32 %s263_s2, 4  ;;  %s141_s13 = int_to_ptr.vmem [resolvable:$true] %s140_s13 }
  0x2b   :  { %s227_s14 = scalar_lea.vmem %s141_s13, 256  ;;  %p232_p3 = scmp.lt.s32.totalorder %s141_s13, %s141_s13 }
  0x2c   :  { %p228_p2 = scmp.ne.s32.totalorder %s141_s13, %s227_s14  ;;  %p233_p4 = scmp.lt.s32.totalorder %s227_s14, %s227_s14 }
  0x2d   :  { %163 = vmatpush3.bf16.msra.mxu0 %v178_v2 }
  0x2e   :  { %p234_p5 = por %p233_p4, %p232_p3 }
  0x30   :  { %165 = vmatmul.mubr.msk.bf16.vlgmr.msra.gmra.mrb[0].mxu0 %vm70_vm1, %v46_v5  ;;  %p235_p6 = pnand %p234_p5, %p228_p2 }
 0x103   :  { %v108_v7 = vpop.f32.mrb[0].mxu0 }
 0x104   :  { %v109_v8 = vadd.f32 %v153_v6, %v108_v7  ;;  %v166_v9 = vpop.f32.mrb[1].mxu0 }
 0x105   :  { %v111_v10 = vpop.f32.mrb[2].mxu0 }
 0x106   :  { %v115_v11 = vmul.f32 %v109_v8, %v109_v8  ;;  %v112_v12 = vadd.f32 %v153_v6, %v111_v10  ;;  %v167_v13 = vpop.f32.mrb[3].mxu0 }
 0x108   :  { %v117_v14 = vmul.f32 %v115_v11, %v109_v8  ;;  %v116_v15 = vmul.f32 %v112_v12, %v112_v12 }
 0x10a   :  { %v119_v16 = vmul.f32 0.044715, %v117_v14  ;;  %v118_v17 = vmul.f32 %v116_v15, %v112_v12 }
 0x10c   :  { %v121_v18 = vadd.f32 %v119_v16, %v109_v8  ;;  %v120_v19 = vmul.f32 0.044715, %v118_v17 }
 0x10e   :  { %v123_v20 = vmul.f32 0.7978846, %v121_v18  ;;  %v122_v21 = vadd.f32 %v120_v19, %v112_v12 }
 0x110   :  { %179 = vtanh.f32 %v123_v20  ;;  %v124_v22 = vmul.f32 0.7978846, %v122_v21 }
 0x112   :  { %181 = vtanh.f32 %v124_v22 }
 0x11a   :  { %v180_v23 = vpop.eup %179 }
 0x11b   :  { %v127_v24 = vadd.f32 1.0, %v180_v23 }
 0x11c   :  { %v182_v25 = vpop.eup %181 }
 0x11d   :  { %v128_v26 = vadd.f32 1.0, %v182_v25  ;;  %v129_v27 = vmul.f32 0.5, %v127_v24 }
 0x11f   :  { %v130_v28 = vmul.f32 0.5, %v128_v26  ;;  %v131_v29 = vmul.f32 %v129_v27, %v109_v8 }
 0x121   :  { %v132_v30 = vmul.f32 %v130_v28, %v112_v12  ;;  %133 = vst [vmem:[#allocation7] sm:$0xff] %v131_v29 }
 0x123   :  { %134 = vst [vmem:[#allocation7 + $0x8] sm:$0xff] %v132_v30 }
 0x124   :  { %238 = shalt.err (!%p235_p6)
}
 0x125   :  { %s239_s17 = scalar_lea.hbm %s332_s3, 256 }
 0x126   :  { %p240_p7 = scmp.ne.s32.totalorder %s332_s3, %s239_s17  ;;  %p243_p8 = scmp.lt.u32.totalorder %s239_s17, %s332_s3 }
 0x128   :  { %p245_p9 = pnand %p243_p8, %p240_p7 }
 0x12a   :  { %248 = shalt.err (!%p245_p9)
}
 0x12b   :  { %146 = dma.vmem_to_hbm [thread:$0]  %s141_s13, 256, %s332_s3, [#allocation4], %s256_s22, %s256_s22, %s257_s23  }
 0x12c   :  { %253 = dma.done.wait [#allocation4], 256  }
 0x12d   :  { %254 = vsyncadd [#allocation4], 4294967040 }
 0x12e   :  { %150 = vsyncpa [#allocation3], 1 }
 0x12f   :  { %151 = vsyncpa [#allocation6], 1 }
 0x130   :  { %152 = vsyncpa [#allocation4], 1 }

</bundles_post_ra>
